<compile_context>
chip_gen: v5e
topology: v5e:2x2
jax: 0.10.0
libtpu: 0.0.40
codegen_flags: <defaults>
</compile_context>

<pallas_src>
import functools

import jax
import jax.numpy as jnp
from jax.experimental import pallas as pl
from jax.experimental.pallas import tpu as pltpu


def _lap_recon_kernel(gw_ref, lap_ref, out_ref, *, tr, W):
    # gw_ref : (NB, h+2, W+4)  even rows of the padded zero-stuffed upsample of x_gau
    #                          (x_gau zero-dilated along W, with a 1-row / 2-col halo);
    #                          full height, reused across all row tiles of an image group.
    # lap_ref: (NB, tr, 2W)    row-pair-merged residual tile: [..., :W] -> output row 2r,
    #                          [..., W:] -> output row 2r+1.
    # out_ref: (NB, tr, 2W)    same row-pair-merged layout.
    j = pl.program_id(1)
    r0 = pl.multiple_of(j * tr, tr)

    # Vertical polyphase pass over x_gau rows; 5x5/64 kernel scale folded into row taps.
    g0 = gw_ref[:, pl.ds(r0, tr), :].astype(jnp.float32)
    g1 = gw_ref[:, pl.ds(r0 + 1, tr), :].astype(jnp.float32)
    g2 = gw_ref[:, pl.ds(r0 + 2, tr), :].astype(jnp.float32)
    a = (1.0 / 64.0) * (g0 + 6.0 * g1 + g2)   # -> even output rows   (NB, tr, W+4)
    bv = (4.0 / 64.0) * (g1 + g2)             # -> odd output rows    (NB, tr, W+4)

    lap = lap_ref[...].astype(jnp.float32)

    # Horizontal 5-tap [1,4,6,4,1] over the zero-dilated rows (odd, all-zero columns
    # contribute nothing, so plain static lane-offset slices suffice).
    def hpass(t):
        return (t[:, :, 0:W] + t[:, :, 4:W + 4]
                + 4.0 * (t[:, :, 1:W + 1] + t[:, :, 3:W + 3])
                + 6.0 * t[:, :, 2:W + 2])

    out_ref[:, :, 0:W] = lap[:, :, 0:W] + hpass(a)
    out_ref[:, :, W:2 * W] = lap[:, :, W:2 * W] + hpass(bv)


def _pick_tiles(n, h, w):
    """Choose (NB images per step, TR g-rows per step) to keep blocks VMEM-friendly."""
    W = 2 * w
    lap_row_bytes = 2 * W * 4                    # one merged output-row-pair, f32
    # Target ~1.5 MiB per lap/out block: double-buffered I/O plus in-kernel temporaries
    # stay well under ~24 MiB even with the full-height gw block resident.
    tr_target = max(8, (3 * 2 ** 19) // lap_row_bytes)
    if tr_target >= h:
        tr = h
    else:
        tr = h                                   # fallback: no suitable divisor
        for cand in range(min(tr_target, h), 7, -1):
            if h % cand == 0 and cand % 8 == 0:  # sublane-dim must be mult. of 8 (or =h)
                tr = cand
                break

    nb = 1
    if tr == h:                                  # small images: batch several per step
        per_img = (2 * h * 2 * W + (h + 2) * (W + 4)) * 4
        nb = max(1, min(n, (2 * 2 ** 20) // max(per_img, 1)))
        while n % nb:                            # nb must divide n
            nb -= 1
    return nb, tr


def laplacian_reconstruction(x_lap, x_gau, _tiles=None):
    """x_gau: (B, C, h, w), x_lap: (B, C, 2h, 2w) -> (B, C, 2h, 2w) float32."""
    b, c, h, w = x_gau.shape
    H, W = 2 * h, 2 * w
    assert x_lap.shape == (b, c, H, W)
    n = b * c

    # Even rows of the padded zero-stuffed upsample: x_gau zero-dilated along W (interior
    # padding) plus the (1,1)/(2,3) zero halo.  ~1/4 of the full-res upsample; the
    # all-zero odd rows never exist anywhere.
    g = x_gau.reshape(n, h, w)
    gw = jax.lax.pad(g, jnp.array(0, dtype=g.dtype),
                     ((0, 0, 0), (1, 1, 0), (2, 3, 1)))          # (n, h+2, W+4)

    # Free view: merge (B, C) and merge output-row pairs into the lane dimension.
    lap2 = x_lap.reshape(n, h, 2 * W)

    nb, tr = _pick_tiles(n, h, w) if _tiles is None else _tiles
    grid = (n // nb, h // tr)

    kernel = functools.partial(_lap_recon_kernel, tr=tr, W=W)

    out2 = pl.pallas_call(
        kernel,
        out_shape=jax.ShapeDtypeStruct((n, h, 2 * W), jnp.float32),
        grid_spec=pltpu.PrefetchScalarGridSpec(
            num_scalar_prefetch=0,
            grid=grid,
            in_specs=[
                # Full-height quarter-size gw block per image group; its block index does
                # not depend on the row-tile axis, so it is DMA'd once per image group.
                pl.BlockSpec((nb, h + 2, W + 4), lambda i, j: (i, 0, 0)),
                pl.BlockSpec((nb, tr, 2 * W), lambda i, j: (i, j, 0)),
            ],
            out_specs=pl.BlockSpec((nb, tr, 2 * W), lambda i, j: (i, j, 0)),
        ),
        compiler_params=pltpu.CompilerParams(
            dimension_semantics=("parallel", "parallel"),
            allow_input_fusion=[True, False],
            vmem_limit_bytes=48 * 1024 * 1024,
        ),
    )(gw, lap2)

    return out2.reshape(b, c, H, W)


_GAUSS_1D = (1.0, 4.0, 6.0, 4.0, 1.0)


def _reference(x_lap, x_gau):
    """Pure-JAX reference (zero-stuff + depthwise conv via conv_general_dilated)."""
    b, c, h, w = x_gau.shape
    H, W = 2 * h, 2 * w
    up = jnp.zeros((b, c, H, W), jnp.float32).at[:, :, ::2, ::2].set(
        x_gau.astype(jnp.float32))
    k1 = jnp.asarray(_GAUSS_1D, jnp.float32)
    k = jnp.outer(k1, k1) * (4.0 / 256.0)
    k = jnp.tile(k[None, None], (c, 1, 1, 1))                    # (C,1,5,5) depthwise
    out = jax.lax.conv_general_dilated(
        up, k, window_strides=(1, 1), padding=((2, 2), (2, 2)),
        dimension_numbers=("NCHW", "OIHW", "NCHW"), feature_group_count=c)
    return out + x_lap.astype(jnp.float32)


if __name__ == "__main__":
    key = jax.random.PRNGKey(0)

    # (b, c, h, w, forced (nb, tr) or None) -- module hard-codes 3 channels (groups=3).
    cases = [
        (2, 3, 8, 8, None),        # tiny maps: NB image-batching path, grid (1, 1)
        (1, 3, 24, 40, None),      # non-square, full-height blocks
        (1, 3, 16, 16, (1, 8)),    # forced row tiling: exercises the (i, j) grid path
    ]

    ok = True
    for b, c, h, w, tiles in cases:
        key, k1, k2 = jax.random.split(key, 3)
        x_gau = jax.random.normal(k1, (b, c, h, w), jnp.float32)
        x_lap = jax.random.normal(k2, (b, c, 2 * h, 2 * w), jnp.float32)

        out = laplacian_reconstruction(x_lap, x_gau, _tiles=tiles)
        out = jax.block_until_ready(out)

        ref = _reference(x_lap, x_gau)
        ok = ok and out.shape == (b, c, 2 * h, 2 * w)
        ok = ok and bool(jnp.allclose(out, ref, atol=1e-4, rtol=1e-4))

    assert ok
    print("KERNEL_OK")
</pallas_src>

<mosaic_0001>
module attributes {stable_mosaic.version = 11 : i64} {
  func.func @_lap_recon_kernel(%arg0: i32, %arg1: i32, %arg2: memref<6x10x20xf32, #tpu.memory_space<vmem>>, %arg3: memref<6x8x32xf32, #tpu.memory_space<vmem>>, %arg4: memref<6x8x32xf32, #tpu.memory_space<vmem>>) attributes {dimension_semantics = [#tpu.dimension_semantics<parallel>, #tpu.dimension_semantics<parallel>], iteration_bounds = array<i64: 1, 1>, scalar_prefetch = 0 : i64, scratch_operands = 0 : i64, tpu.core_type = #tpu.core_type<tc>, window_params = [{transform_indices = @transform_0, window_bounds = array<i64: 6, 10, 20>}, {transform_indices = @transform_1, window_bounds = array<i64: 6, 8, 32>}, {transform_indices = @transform_2, window_bounds = array<i64: 6, 8, 32>}]} {
    %c8_i32 = arith.constant 8 : i32
    %0 = arith.muli %arg1, %c8_i32 : i32
    %1 = tpu.assume_multiple %0, 8 : i32
    %c0 = arith.constant 0 : index
    %2 = arith.index_cast %1 : i32 to index
    %c0_0 = arith.constant 0 : index
    %3 = vector.load %arg2[%c0, %2, %c0_0] : memref<6x10x20xf32, #tpu.memory_space<vmem>>, vector<6x8x20xf32>
    %c1_i32 = arith.constant 1 : i32
    %4 = arith.addi %1, %c1_i32 : i32
    %c0_1 = arith.constant 0 : index
    %5 = arith.index_cast %4 : i32 to index
    %c0_2 = arith.constant 0 : index
    %6 = vector.load %arg2[%c0_1, %5, %c0_2] : memref<6x10x20xf32, #tpu.memory_space<vmem>>, vector<6x8x20xf32>
    %c2_i32 = arith.constant 2 : i32
    %7 = arith.addi %1, %c2_i32 : i32
    %c0_3 = arith.constant 0 : index
    %8 = arith.index_cast %7 : i32 to index
    %c0_4 = arith.constant 0 : index
    %9 = vector.load %arg2[%c0_3, %8, %c0_4] : memref<6x10x20xf32, #tpu.memory_space<vmem>>, vector<6x8x20xf32>
    %cst = arith.constant 6.000000e+00 : f32
    %10 = vector.broadcast %cst : f32 to vector<6x8x20xf32>
    %11 = arith.mulf %10, %6 : vector<6x8x20xf32>
    %12 = arith.addf %3, %11 : vector<6x8x20xf32>
    %13 = arith.addf %12, %9 : vector<6x8x20xf32>
    %cst_5 = arith.constant 1.562500e-02 : f32
    %14 = vector.broadcast %cst_5 : f32 to vector<6x8x20xf32>
    %15 = arith.mulf %14, %13 : vector<6x8x20xf32>
    %16 = arith.addf %6, %9 : vector<6x8x20xf32>
    %cst_6 = arith.constant 6.250000e-02 : f32
    %17 = vector.broadcast %cst_6 : f32 to vector<6x8x20xf32>
    %18 = arith.mulf %17, %16 : vector<6x8x20xf32>
    %c0_7 = arith.constant 0 : index
    %c0_8 = arith.constant 0 : index
    %c0_9 = arith.constant 0 : index
    %19 = vector.load %arg3[%c0_7, %c0_8, %c0_9] : memref<6x8x32xf32, #tpu.memory_space<vmem>>, vector<6x8x32xf32>
    %20 = vector.extract_strided_slice %19 {offsets = [0, 0, 0], sizes = [6, 8, 16], strides = [1, 1, 1]} : vector<6x8x32xf32> to vector<6x8x16xf32>
    %21 = vector.extract_strided_slice %15 {offsets = [0, 0, 0], sizes = [6, 8, 16], strides = [1, 1, 1]} : vector<6x8x20xf32> to vector<6x8x16xf32>
    %22 = vector.extract_strided_slice %15 {offsets = [0, 0, 4], sizes = [6, 8, 16], strides = [1, 1, 1]} : vector<6x8x20xf32> to vector<6x8x16xf32>
    %23 = arith.addf %21, %22 : vector<6x8x16xf32>
    %24 = vector.extract_strided_slice %15 {offsets = [0, 0, 1], sizes = [6, 8, 16], strides = [1, 1, 1]} : vector<6x8x20xf32> to vector<6x8x16xf32>
    %25 = vector.extract_strided_slice %15 {offsets = [0, 0, 3], sizes = [6, 8, 16], strides = [1, 1, 1]} : vector<6x8x20xf32> to vector<6x8x16xf32>
    %26 = arith.addf %24, %25 : vector<6x8x16xf32>
    %cst_10 = arith.constant 4.000000e+00 : f32
    %27 = vector.broadcast %cst_10 : f32 to vector<6x8x16xf32>
    %28 = arith.mulf %27, %26 : vector<6x8x16xf32>
    %29 = arith.addf %23, %28 : vector<6x8x16xf32>
    %30 = vector.extract_strided_slice %15 {offsets = [0, 0, 2], sizes = [6, 8, 16], strides = [1, 1, 1]} : vector<6x8x20xf32> to vector<6x8x16xf32>
    %cst_11 = arith.constant 6.000000e+00 : f32
    %31 = vector.broadcast %cst_11 : f32 to vector<6x8x16xf32>
    %32 = arith.mulf %31, %30 : vector<6x8x16xf32>
    %33 = arith.addf %29, %32 : vector<6x8x16xf32>
    %34 = arith.addf %20, %33 : vector<6x8x16xf32>
    %c0_12 = arith.constant 0 : index
    %c0_13 = arith.constant 0 : index
    %c0_14 = arith.constant 0 : index
    %35 = vector.load %arg4[%c0_12, %c0_13, %c0_14] : memref<6x8x32xf32, #tpu.memory_space<vmem>>, vector<6x8x16xf32>
    tpu.vector_store %arg4[%c0_12, %c0_13, %c0_14], %34 {strides = array<i32>} : memref<6x8x32xf32, #tpu.memory_space<vmem>>, vector<6x8x16xf32>,
    %36 = vector.extract_strided_slice %19 {offsets = [0, 0, 16], sizes = [6, 8, 16], strides = [1, 1, 1]} : vector<6x8x32xf32> to vector<6x8x16xf32>
    %37 = vector.extract_strided_slice %18 {offsets = [0, 0, 0], sizes = [6, 8, 16], strides = [1, 1, 1]} : vector<6x8x20xf32> to vector<6x8x16xf32>
    %38 = vector.extract_strided_slice %18 {offsets = [0, 0, 4], sizes = [6, 8, 16], strides = [1, 1, 1]} : vector<6x8x20xf32> to vector<6x8x16xf32>
    %39 = arith.addf %37, %38 : vector<6x8x16xf32>
    %40 = vector.extract_strided_slice %18 {offsets = [0, 0, 1], sizes = [6, 8, 16], strides = [1, 1, 1]} : vector<6x8x20xf32> to vector<6x8x16xf32>
    %41 = vector.extract_strided_slice %18 {offsets = [0, 0, 3], sizes = [6, 8, 16], strides = [1, 1, 1]} : vector<6x8x20xf32> to vector<6x8x16xf32>
    %42 = arith.addf %40, %41 : vector<6x8x16xf32>
    %cst_15 = arith.constant 4.000000e+00 : f32
    %43 = vector.broadcast %cst_15 : f32 to vector<6x8x16xf32>
    %44 = arith.mulf %43, %42 : vector<6x8x16xf32>
    %45 = arith.addf %39, %44 : vector<6x8x16xf32>
    %46 = vector.extract_strided_slice %18 {offsets = [0, 0, 2], sizes = [6, 8, 16], strides = [1, 1, 1]} : vector<6x8x20xf32> to vector<6x8x16xf32>
    %cst_16 = arith.constant 6.000000e+00 : f32
    %47 = vector.broadcast %cst_16 : f32 to vector<6x8x16xf32>
    %48 = arith.mulf %47, %46 : vector<6x8x16xf32>
    %49 = arith.addf %45, %48 : vector<6x8x16xf32>
    %50 = arith.addf %36, %49 : vector<6x8x16xf32>
    %c0_17 = arith.constant 0 : index
    %c0_18 = arith.constant 0 : index
    %c16 = arith.constant 16 : index
    %51 = vector.load %arg4[%c0_17, %c0_18, %c16] : memref<6x8x32xf32, #tpu.memory_space<vmem>>, vector<6x8x16xf32>
    tpu.vector_store %arg4[%c0_17, %c0_18, %c16], %50 {strides = array<i32>} : memref<6x8x32xf32, #tpu.memory_space<vmem>>, vector<6x8x16xf32>,
    return
  }
  func.func @transform_0(%arg0: i32, %arg1: i32) -> (i32, i32, i32) {
    %c0_i32 = arith.constant 0 : i32
    %c0_i32_0 = arith.constant 0 : i32
    %c0_i32_1 = arith.constant 0 : i32
    return %arg0, %c0_i32, %c0_i32_0 : i32, i32, i32
  }
  func.func @transform_1(%arg0: i32, %arg1: i32) -> (i32, i32, i32) {
    %c0_i32 = arith.constant 0 : i32
    %c0_i32_0 = arith.constant 0 : i32
    return %arg0, %arg1, %c0_i32 : i32, i32, i32
  }
  func.func @transform_2(%arg0: i32, %arg1: i32) -> (i32, i32, i32) {
    %c0_i32 = arith.constant 0 : i32
    %c0_i32_0 = arith.constant 0 : i32
    return %arg0, %arg1, %c0_i32 : i32, i32, i32
  }
}

</mosaic_0001>

<bundles_post_ra>
// kernel: tpu_custom_call.1
= control target key start
LH: loop header
LB: loop body
LE: loop exit
PB: predicated region body
PF: predicated region fallthrough
CT: control target
= control target key end

     0   :  { %s714_s0 = inlined_call_operand.vmem [shape: f32[6,10,20], index: 0, kind: input, shape index: {}]   ;;  %s715_s1 = inlined_call_operand.vmem [shape: f32[6,8,32], index: 1, kind: input, shape index: {}]   ;;  %s716_s2 = inlined_call_operand.hbm [shape: f32[6,8,32], index: 2, kind: output, shape index: {}]  }
   0x1   :  { %v18_v0 = vld [vmem:[%s714_s0 + $0x40] sm:$0xff]  ;;  %v19_v12 = vld [vmem:[%s714_s0 + $0x50] sm:$0xff] }
   0x2   :  { %v473_v1 = vld [vmem:[%s714_s0 + $0x41] sm:$0xff]  ;;  %v405_v13 = vld [vmem:[%s714_s0 + $0x51] sm:$0xff] }
   0x3   :  { %v40_v2 = vmul.f32 6.0, %v473_v1  ;;  %v16_v3 = vld [vmem:[%s714_s0 + $0x20] sm:$0xff]  ;;  %v41_v16 = vmul.f32 6.0, %v405_v13  ;;  %v17_v17 = vld [vmem:[%s714_s0 + $0x30] sm:$0xff] }
   0x4   :  { %v402_v4 = vld [vmem:[%s714_s0 + $0x21] sm:$0xff]  ;;  %v403_v18 = vld [vmem:[%s714_s0 + $0x31] sm:$0xff] }
   0x5   :  { %v410_v5 = vld [vmem:[%s714_s0 + $0x42] sm:$0xff]  ;;  %v38_v6 = vmul.f32 6.0, %v402_v4  ;;  %v46_v9 = vadd.f32 %v40_v2, %v18_v0  ;;  %v39_v21 = vmul.f32 6.0, %v403_v18  ;;  %v15_v22 = vld [vmem:[%s714_s0 + $0x10] sm:$0xff]  ;;  %v47_v26 = vadd.f32 %v41_v16, %v19_v12 }
   0x6   :  { %v14_v7 = vld [vmem:[%s714_s0] sm:$0xff]  ;;  %v401_v23 = vld [vmem:[%s714_s0 + $0x11] sm:$0xff] }
   0x7   :  { %v400_v8 = vld [vmem:[%s714_s0 + $0x1] sm:$0xff]  ;;  %v44_v14 = vadd.f32 %v38_v6, %v16_v3  ;;  %v52_v19 = vadd.f32 %v410_v5, %v46_v9  ;;  %v411_v25 = vld [vmem:[%s714_s0 + $0x52] sm:$0xff]  ;;  %v37_v27 = vmul.f32 6.0, %v401_v23 }
   0x8   :  { %v408_v10 = vld [vmem:[%s714_s0 + $0x22] sm:$0xff]  ;;  %v36_v11 = vmul.f32 6.0, %v400_v8 }
   0x9   :  { %v406_v15 = vld [vmem:[%s714_s0 + $0x2] sm:$0xff]  ;;  %v50_v24 = vadd.f32 %v408_v10, %v44_v14 }
   0xa   :  { %v42_v20 = vadd.f32 %v36_v11, %v14_v7 }
   0xb   :  { %7 = vsyncpa [#allocation3], 0  ;;  %v518_v28 = vmul.f32 0.015625, %v52_v19  ;;  %v409_v30 = vld [vmem:[%s714_s0 + $0x32] sm:$0xff]  ;;  %v45_v31 = vadd.f32 %v39_v21, %v17_v17  ;;  %v523_v32 = vmul.f32 0.015625, %v50_v24  ;;  %v43_v34 = vadd.f32 %v37_v27, %v15_v22  ;;  %s445_s17 = smov 124  }
   0xc   :  { %v48_v29 = vadd.f32 %v406_v15, %v42_v20  ;;  %v407_v33 = vld [vmem:[%s714_s0 + $0x12] sm:$0xff]  ;;  %v53_v36 = vadd.f32 %v411_v25, %v47_v26  ;;  %s446_s0 = smov 126   ;;  %v62_v42 = vadd.f32 %v408_v10, %v402_v4  ;;  %v60_v44 = vadd.f32 %v406_v15, %v400_v8  ;;  %s447_s18 = smov 127  }
   0xd   :  { %92 = vrot.lane.b32.xlu2 %v518_v28, %s445_s17  ;;  %88 = vrot.lane.b32.xlu1 %v523_v32, %s445_s17  ;;  %v51_v37 = vadd.f32 %v409_v30, %v45_v31  ;;  %v49_v38 = vadd.f32 %v407_v33, %v43_v34  ;;  %v61_v43 = vadd.f32 %v407_v33, %v401_v23  ;;  %v170_v33 = vmul.f32 6.0, %v523_v32  ;;  %s448_s19 = smov 16   ;;  %s386_s7 = sshll.u32 %s716_s2, 4  ;;  %s387_s7 = int_to_ptr.hbm [resolvable:$true] %s386_s7 }
   0xe   :  { %v530_v35 = vmul.f32 0.015625, %v48_v29  ;;  %v536_v39 = vmul.f32 0.015625, %v53_v36  ;;  %v560_v45 = vmul.f32 0.0625, %v62_v42  ;;  %v564_v47 = vmul.f32 0.0625, %v60_v44  ;;  %s450_s8 = smov 128   ;;  %s451_s9 = smov 8  }
   0xf   :  { %v538_v40 = vmul.f32 0.015625, %v51_v37  ;;  %v540_v41 = vmul.f32 0.015625, %v49_v38  ;;  %v562_v46 = vmul.f32 0.0625, %v61_v43  ;;  %v65_v48 = vadd.f32 %v411_v25, %v405_v13 }
  0x10   :  { %84 = vrot.lane.b32.xlu0 %v530_v35, %s445_s17  ;;  %v64_v49 = vadd.f32 %v410_v5, %v473_v1  ;;  %v63_v50 = vadd.f32 %v409_v30, %v403_v18  ;;  %v168_v54 = vmul.f32 6.0, %v530_v35  ;;  %v309_v55 = vmul.f32 6.0, %v560_v45 }
  0x11   :  { %v573_v51 = vmul.f32 0.0625, %v65_v48  ;;  %v308_v58 = vmul.f32 6.0, %v562_v46  ;;  %v307_v59 = vmul.f32 6.0, %v564_v47  ;;  %v171_v16 = vmul.f32 6.0, %v538_v40 }
  0x12   :  { %v575_v52 = vmul.f32 0.0625, %v64_v49  ;;  %v577_v53 = vmul.f32 0.0625, %v63_v50  ;;  %v169_v36 = vmul.f32 6.0, %v540_v41  ;;  %v173_v37 = vmul.f32 6.0, %v536_v39 }
  0x13   :  { %v312_v13 = vmul.f32 6.0, %v573_v51  ;;  %v172_v38 = vmul.f32 6.0, %v518_v28  ;;  %vm210_vm0 = vcmask 130048   ;;  %vm373_vm1 = vcmask 261248  }
  0x14   :  { %v311_v61 = vmul.f32 6.0, %v575_v52  ;;  %v310_v62 = vmul.f32 6.0, %v577_v53 }
  0x15   :  { %94 = vrot.lane.b32.xlu2 %v536_v39, %s445_s17  ;;  %90 = vrot.lane.b32.xlu1 %v538_v40, %s445_s17 }
  0x18   :  { %86 = vrot.lane.b32.xlu0 %v540_v41, %s445_s17 }
  0x1d   :  { %112 = vrot.lane.b32.xlu2 %v523_v32, %s446_s0  ;;  %110 = vrot.lane.b32.xlu1 %v540_v41, %s446_s0 }
  0x20   :  { %108 = vrot.lane.b32.xlu0 %v530_v35, %s446_s0 }
  0x25   :  { %118 = vrot.lane.b32.xlu2 %v536_v39, %s446_s0  ;;  %116 = vrot.lane.b32.xlu1 %v518_v28, %s446_s0 }
  0x28   :  { %114 = vrot.lane.b32.xlu0 %v538_v40, %s446_s0 }
  0x2d   :  { %251 = vrot.lane.b32.xlu2 %v560_v45, %s446_s0  ;;  %249 = vrot.lane.b32.xlu1 %v562_v46, %s446_s0 }
  0x30   :  { %247 = vrot.lane.b32.xlu0 %v564_v47, %s446_s0 }
  0x35   :  { %257 = vrot.lane.b32.xlu2 %v573_v51, %s446_s0  ;;  %255 = vrot.lane.b32.xlu1 %v575_v52, %s446_s0 }
  0x38   :  { %253 = vrot.lane.b32.xlu0 %v577_v53, %s446_s0 }
  0x3d   :  { %225 = vrot.lane.b32.xlu2 %v562_v46, %s445_s17  ;;  %223 = vrot.lane.b32.xlu1 %v564_v47, %s445_s17 }
  0x40   :  { %180 = vrot.lane.b32.xlu0 %v168_v54, %s446_s0 }
  0x45   :  { %231 = vrot.lane.b32.xlu2 %v575_v52, %s445_s17  ;;  %229 = vrot.lane.b32.xlu1 %v577_v53, %s445_s17 }
  0x48   :  { %227 = vrot.lane.b32.xlu0 %v560_v45, %s445_s17 }
  0x4d   :  { %321 = vrot.lane.b32.xlu2 %v308_v58, %s446_s0  ;;  %319 = vrot.lane.b32.xlu1 %v307_v59, %s446_s0 }
  0x50   :  { %233 = vrot.lane.b32.xlu0 %v573_v51, %s445_s17 }
  0x55   :  { %327 = vrot.lane.b32.xlu2 %v311_v61, %s446_s0  ;;  %325 = vrot.lane.b32.xlu1 %v310_v62, %s446_s0 }
  0x58   :  { %323 = vrot.lane.b32.xlu0 %v309_v55, %s446_s0 }
  0x67   :  { %v601_v56 = vpop.permute.xlu2 %92 }
  0x6f   :  { %v603_v57 = vpop.permute.xlu2 %94 }
  0x77   :  { %v113_v60 = vpop.permute.xlu2 %112 }
  0x78   :  { %v128_v42 = vadd.f32 %v113_v60, %v523_v32 }
  0x7a   :  { %v134_v44 = vmul.f32 4.0, %v128_v42 }
  0x7f   :  { %v119_v63 = vpop.permute.xlu2 %118  ;;  %v613_v0 = vpop.permute.xlu1 %88 }
  0x80   :  { %v131_v49 = vadd.f32 %v119_v63, %v536_v39 }
  0x82   :  { %v615_v1 = vpop.permute.xlu0 %84  ;;  %v137_v54 = vmul.f32 4.0, %v131_v49 }
  0x87   :  { %v252_v2 = vpop.permute.xlu2 %251  ;;  %v618_v4 = vpop.permute.xlu1 %90 }
  0x88   :  { %v267_v3 = vadd.f32 %v252_v2, %v560_v45 }
  0x8a   :  { %v620_v5 = vpop.permute.xlu0 %86  ;;  %v273_v6 = vmul.f32 4.0, %v267_v3 }
  0x8c   :  { %287 = vrot.lane.b32.xlu0 %v273_v6, %s447_s18 }
  0x8f   :  { %v258_v7 = vpop.permute.xlu2 %257  ;;  %v111_v9 = vpop.permute.xlu1 %110 }
  0x90   :  { %v270_v8 = vadd.f32 %v258_v7, %v573_v51  ;;  %v127_v43 = vadd.f32 %v111_v9, %v540_v41 }
  0x92   :  { %v109_v10 = vpop.permute.xlu0 %108  ;;  %v276_v11 = vmul.f32 4.0, %v270_v8  ;;  %v133_v48 = vmul.f32 4.0, %v127_v43 }
  0x93   :  { %v126_v22 = vadd.f32 %v109_v10, %v530_v35 }
  0x94   :  { %293 = vrot.lane.b32.xlu0 %v276_v11, %s447_s18 }
  0x95   :  { %v132_v26 = vmul.f32 4.0, %v126_v22 }
  0x97   :  { %v117_v12 = vpop.permute.xlu1 %116  ;;  %v226_v59 = vpop.permute.xlu2 %225 }
  0x98   :  { %v130_v50 = vadd.f32 %v117_v12, %v518_v28  ;;  %v242_v9 = vadd.f32 %v226_v59, %v562_v46 }
  0x9a   :  { %v115_v14 = vpop.permute.xlu0 %114  ;;  %v136_v55 = vmul.f32 4.0, %v130_v50  ;;  %v107_v50 = vadd.f32 %v603_v57, %v536_v39  ;;  %v103_v57 = vadd.f32 %v620_v5, %v540_v41 }
  0x9b   :  { %v129_v31 = vadd.f32 %v115_v14, %v538_v40 }
  0x9c   :  { %329 = vrot.lane.b32.xlu0 %v312_v13, %s446_s0 }
  0x9d   :  { %v135_v34 = vmul.f32 4.0, %v129_v31 }
  0x9f   :  { %v250_v15 = vpop.permute.xlu1 %249  ;;  %v232_v61 = vpop.permute.xlu2 %231 }
  0xa0   :  { %v266_v17 = vadd.f32 %v250_v15, %v562_v46 }
  0xa2   :  { %v248_v18 = vpop.permute.xlu0 %247  ;;  %v272_v20 = vmul.f32 4.0, %v266_v17  ;;  %v245_v17 = vadd.f32 %v232_v61, %v575_v52  ;;  %v75_v61 = vld [vmem:[%s715_s1 + $0x18] sm:$0xff] }
  0xa3   :  { %v265_v19 = vadd.f32 %v248_v18, %v564_v47 }
  0xa4   :  { %186 = vrot.lane.b32.xlu0 %v171_v16, %s446_s0  ;;  %285 = vrot.lane.b32.xlu2 %v272_v20, %s447_s18 }
  0xa5   :  { %v271_v21 = vmul.f32 4.0, %v265_v19 }
  0xa7   :  { %283 = vrot.lane.b32.xlu1 %v271_v21, %s447_s18  ;;  %v256_v23 = vpop.permute.xlu1 %255  ;;  %v322_v2 = vpop.permute.xlu2 %321 }
  0xa8   :  { %v269_v24 = vadd.f32 %v256_v23, %v575_v52 }
  0xaa   :  { %v254_v25 = vpop.permute.xlu0 %253  ;;  %v275_v29 = vmul.f32 4.0, %v269_v24 }
  0xab   :  { %v268_v27 = vadd.f32 %v254_v25, %v577_v53 }
  0xac   :  { %144 = vrot.lane.b32.xlu0 %v132_v26, %s447_s18  ;;  %291 = vrot.lane.b32.xlu2 %v275_v29, %s447_s18 }
  0xad   :  { %v274_v30 = vmul.f32 4.0, %v268_v27 }
  0xaf   :  { %289 = vrot.lane.b32.xlu1 %v274_v30, %s447_s18  ;;  %v224_v3 = vpop.permute.xlu1 %223  ;;  %v328_v7 = vpop.permute.xlu2 %327 }
  0xb0   :  { %v241_v27 = vadd.f32 %v224_v3, %v564_v47  ;;  %v72_v47 = vld [vmem:[%s715_s1] sm:$0xff] }
  0xb2   :  { %v181_v58 = vpop.permute.xlu0 %180 }
  0xb4   :  { %150 = vrot.lane.b32.xlu0 %v135_v34, %s447_s18  ;;  %184 = vrot.lane.b32.xlu2 %v170_v33, %s446_s0  ;;  %v104_v33 = vadd.f32 %v613_v0, %v523_v32 }
  0xb7   :  { %182 = vrot.lane.b32.xlu1 %v169_v36, %s446_s0  ;;  %v230_v8 = vpop.permute.xlu1 %229 }
  0xb8   :  { %v244_v36 = vadd.f32 %v230_v8, %v577_v53  ;;  %v105_v53 = vadd.f32 %v618_v4, %v538_v40  ;;  %v77_v40 = vld [vmem:[%s715_s1 + $0x28] sm:$0xff] }
  0xb9   :  { %v73_v8 = vld [vmem:[%s715_s1 + $0x8] sm:$0xff] }
  0xba   :  { %v228_v60 = vpop.permute.xlu0 %227 }
  0xbb   :  { %v243_v63 = vadd.f32 %v228_v60, %v560_v45 }
  0xbc   :  { %190 = vrot.lane.b32.xlu2 %v173_v37, %s446_s0 }
  0xbf   :  { %188 = vrot.lane.b32.xlu1 %v172_v38, %s446_s0  ;;  %v320_v16 = vpop.permute.xlu1 %319 }
  0xc2   :  { %v234_v62 = vpop.permute.xlu0 %233 }
  0xc3   :  { %v246_v19 = vadd.f32 %v234_v62, %v573_v51  ;;  %v102_v51 = vadd.f32 %v615_v1, %v530_v35  ;;  %v74_v35 = vld [vmem:[%s715_s1 + $0x10] sm:$0xff] }
  0xc4   :  { %148 = vrot.lane.b32.xlu2 %v134_v44, %s447_s18 }
  0xc7   :  { %146 = vrot.lane.b32.xlu1 %v133_v48, %s447_s18  ;;  %v326_v22 = vpop.permute.xlu1 %325 }
  0xca   :  { %v324_v6 = vpop.permute.xlu0 %323 }
  0xcc   :  { %154 = vrot.lane.b32.xlu2 %v137_v54, %s447_s18 }
  0xcf   :  { %152 = vrot.lane.b32.xlu1 %v136_v55, %s447_s18 }
  0xfe   :  { %v288_v10 = vpop.permute.xlu0 %287  ;;  %v286_v11 = vpop.permute.xlu2 %285 }
  0xff   :  { %v303_v12 = vadd.f32 %v288_v10, %v243_v63  ;;  %v302_v13 = vadd.f32 %v286_v11, %v242_v9  ;;  %v106_v10 = vadd.f32 %v601_v56, %v518_v28 }
 0x101   :  { %v339_v14 = vadd.f32 %v324_v6, %v303_v12  ;;  %v338_v15 = vadd.f32 %v322_v2, %v302_v13  ;;  %v76_v13 = vld [vmem:[%s715_s1 + $0x20] sm:$0xff]  ;;  %s449_s1 = smov [#allocation2]  }
 0x102   :  { %s384_s4 = sshll.u32 %s449_s1, 4  ;;  %s385_s4 = int_to_ptr.vmem [resolvable:$true] %s384_s4 }
 0x103   :  { %353 = vrot.lane.b32.xlu2 %v339_v14, %s448_s19  ;;  %351 = vrot.lane.b32.xlu1 %v338_v15, %s448_s19 }
 0x106   :  { %v294_v18 = vpop.permute.xlu0 %293  ;;  %v292_v45 = vpop.permute.xlu2 %291 }
 0x107   :  { %v305_v20 = vadd.f32 %v292_v45, %v245_v17  ;;  %v306_v21 = vadd.f32 %v294_v18, %v246_v19 }
 0x109   :  { %v341_v46 = vadd.f32 %v328_v7, %v305_v20 }
 0x10b   :  { %357 = vrot.lane.b32.xlu1 %v341_v46, %s448_s19 }
 0x10e   :  { %v330_v23 = vpop.permute.xlu0 %329  ;;  %v185_v24 = vpop.permute.xlu2 %184 }
 0x10f   :  { %v342_v25 = vadd.f32 %v330_v23, %v306_v21 }
 0x111   :  { %359 = vrot.lane.b32.xlu2 %v342_v25, %s448_s19 }
 0x116   :  { %v187_v26 = vpop.permute.xlu0 %186  ;;  %v191_v29 = vpop.permute.xlu2 %190 }
 0x119   :  { %v284_v52 = vpop.permute.xlu1 %283 }
 0x11a   :  { %v301_v30 = vadd.f32 %v284_v52, %v241_v27 }
 0x11c   :  { %v337_v31 = vadd.f32 %v320_v16, %v301_v30 }
 0x11e   :  { %349 = vrot.lane.b32.xlu0 %v337_v31, %s448_s19  ;;  %v145_v34 = vpop.permute.xlu0 %144  ;;  %v149_v37 = vpop.permute.xlu2 %148 }
 0x11f   :  { %v162_v38 = vadd.f32 %v145_v34, %v102_v51  ;;  %v164_v42 = vadd.f32 %v149_v37, %v104_v33 }
 0x121   :  { %v290_v43 = vpop.permute.xlu1 %289  ;;  %v198_v48 = vadd.f32 %v181_v58, %v162_v38  ;;  %v200_v1 = vadd.f32 %v185_v24, %v164_v42 }
 0x122   :  { %v304_v44 = vadd.f32 %v290_v43, %v244_v36 }
 0x123   :  { %v204_v0 = vadd.f32 %v198_v48, %v72_v47  ;;  %v206_v49 = vadd.f32 %v200_v1, %v74_v35 }
 0x124   :  { %v340_v32 = vadd.f32 %v326_v22, %v304_v44 }
 0x125   :  { %211 = vst.msk [vmem:[#allocation2] sm:$0xff] %vm210_vm0, %v204_v0 }
 0x126   :  { %355 = vrot.lane.b32.xlu0 %v340_v32, %s448_s19  ;;  %v151_v54 = vpop.permute.xlu0 %150  ;;  %213 = vst.msk [vmem:[#allocation2 + $0x10] sm:$0xff] %vm210_vm0, %v206_v49  ;;  %v155_v55 = vpop.permute.xlu2 %154 }
 0x127   :  { %v165_v58 = vadd.f32 %v151_v54, %v105_v53  ;;  %v167_v59 = vadd.f32 %v155_v55, %v107_v50 }
 0x129   :  { %v183_v60 = vpop.permute.xlu1 %182  ;;  %v201_v62 = vadd.f32 %v187_v26, %v165_v58  ;;  %v203_v4 = vadd.f32 %v191_v29, %v167_v59 }
 0x12b   :  { %v207_v2 = vadd.f32 %v201_v62, %v75_v61  ;;  %v209_v3 = vadd.f32 %v203_v4, %v77_v40 }
 0x12d   :  { %214 = vst.msk [vmem:[#allocation2 + $0x18] sm:$0xff] %vm210_vm0, %v207_v2 }
 0x12e   :  { %216 = vst.msk [vmem:[#allocation2 + $0x28] sm:$0xff] %vm210_vm0, %v209_v3 }
 0x131   :  { %v189_v39 = vpop.permute.xlu1 %188 }
 0x139   :  { %v147_v6 = vpop.permute.xlu1 %146 }
 0x13a   :  { %v163_v7 = vadd.f32 %v147_v6, %v103_v57 }
 0x13c   :  { %v199_v63 = vadd.f32 %v183_v60, %v163_v7 }
 0x13e   :  { %v205_v9 = vadd.f32 %v199_v63, %v73_v8 }
 0x140   :  { %212 = vst.msk [vmem:[#allocation2 + $0x8] sm:$0xff] %vm210_vm0, %v205_v9 }
 0x141   :  { %v153_v11 = vpop.permute.xlu1 %152 }
 0x142   :  { %v166_v12 = vadd.f32 %v153_v11, %v106_v10 }
 0x144   :  { %v202_v41 = vadd.f32 %v189_v39, %v166_v12 }
 0x146   :  { %v208_v5 = vadd.f32 %v202_v41, %v76_v13 }
 0x148   :  { %215 = vst.msk [vmem:[#allocation2 + $0x20] sm:$0xff] %vm210_vm0, %v208_v5 }
 0x15d   :  { %v354_v14 = vpop.permute.xlu2 %353 }
 0x15e   :  { %v369_v15 = vadd.f32 %v354_v14, %v74_v35 }
 0x160   :  { %376 = vst.msk [vmem:[#allocation2 + $0x10] sm:$0xff] %vm373_vm1, %v369_v15 }
 0x16b   :  { %v360_v16 = vpop.permute.xlu2 %359 }
 0x16c   :  { %v372_v17 = vadd.f32 %v360_v16, %v77_v40 }
 0x16e   :  { %379 = vst.msk [vmem:[#allocation2 + $0x28] sm:$0xff] %vm373_vm1, %v372_v17 }
 0x175   :  { %v352_v28 = vpop.permute.xlu1 %351 }
 0x176   :  { %v368_v56 = vadd.f32 %v352_v28, %v73_v8 }
 0x178   :  { %375 = vst.msk [vmem:[#allocation2 + $0x8] sm:$0xff] %vm373_vm1, %v368_v56 }
 0x17d   :  { %v358_v18 = vpop.permute.xlu1 %357 }
 0x17e   :  { %v371_v19 = vadd.f32 %v358_v18, %v76_v13 }
 0x180   :  { %378 = vst.msk [vmem:[#allocation2 + $0x20] sm:$0xff] %vm373_vm1, %v371_v19 }
 0x190   :  { %v350_v45 = vpop.permute.xlu0 %349 }
 0x191   :  { %v367_v20 = vadd.f32 %v350_v45, %v72_v47 }
 0x193   :  { %374 = vst.msk [vmem:[#allocation2] sm:$0xff] %vm373_vm1, %v367_v20 }
 0x198   :  { %v356_v46 = vpop.permute.xlu0 %355 }
 0x199   :  { %v370_v21 = vadd.f32 %v356_v46, %v75_v61 }
 0x19b   :  { %377 = vst.msk [vmem:[#allocation2 + $0x18] sm:$0xff] %vm373_vm1, %v370_v21 }
 0x19c   :  { %392 = dma.vmem_to_hbm [thread:$0]  %s385_s4, 768, %s387_s7, [#allocation3], %s450_s8, %s450_s8, %s451_s9  }
 0x19d   :  { %443 = dma.done.wait [#allocation3], 768  }
 0x19e   :  { %444 = vsyncadd [#allocation3], 4294966528 }
 0x19f   :  { %397 = vsyncpa [#allocation3], 1 }

</bundles_post_ra>
